<compile_context>
chip_gen: v7x
topology: tpu7x:2x2x1
jax: 0.10.0
libtpu: 0.0.40
codegen_flags: <defaults>
</compile_context>

<pallas_src>
import numpy as np
import jax
import jax.numpy as jnp
from jax.experimental import pallas as pl
from jax.experimental.pallas import tpu as pltpu


# --------------------------------------------------------------------------
# Kernel (factory bakes in compile-time constants)
# --------------------------------------------------------------------------
def make_cbam_kernel(hw_real, hw_pad, ew_dtype, bblk):
    inv_hw = np.float32(1.0 / hw_real)
    padded = hw_pad != hw_real

    def kernel(x_ref, w1t_ref, w2t_ref, k_ref, o_ref, x1_ref):
        # x block: (bblk, C, HWp) -- HWp is the lane axis (multiple of 128).
        x = x_ref[...].astype(ew_dtype)

        # ---------------- channel attention ----------------
        sum_c = jnp.sum(x, axis=2, dtype=jnp.float32)            # (bblk, C)
        if padded:
            lane = jax.lax.broadcasted_iota(jnp.int32, x.shape, 2)
            x_mx = jnp.where(lane < hw_real, x,
                             jnp.asarray(-jnp.inf, dtype=ew_dtype))
        else:
            x_mx = x
        max_c = jnp.max(x_mx, axis=2).astype(jnp.float32)        # (bblk, C)
        avg_c = sum_c * inv_hw                                   # true mean

        w1t = w1t_ref[...].astype(jnp.float32)                   # (C, Cr)
        w2t = w2t_ref[...].astype(jnp.float32)                   # (Cr, C)

        # Fused shared-MLP over stacked [avg; max]: 2 MXU ops instead of 4.
        stacked = jnp.concatenate([avg_c, max_c], axis=0)        # (2*bblk, C)
        h = jnp.maximum(
            jnp.dot(stacked, w1t, preferred_element_type=jnp.float32), 0.0)
        fc = jnp.dot(h, w2t, preferred_element_type=jnp.float32)  # (2*bblk, C)
        ca = jax.nn.sigmoid(fc[:bblk] + fc[bblk:]).astype(ew_dtype)

        x1 = x * ca[:, :, None]                                  # (bblk, C, HWp)
        x1_ref[...] = x1            # stage through VMEM (vreg-pressure relief)

        # ---------------- spatial attention ----------------
        # 1/C of the channel mean is folded into the avg half of K on the host,
        # so a channel-sum is enough here.
        sum_s = jnp.sum(x1, axis=1, dtype=jnp.float32)           # (bblk, HWp)
        max_s = jnp.max(x1, axis=1).astype(jnp.float32)          # (bblk, HWp)
        pooled = jnp.concatenate([sum_s, max_s], axis=-1)        # (bblk, 2*HWp)

        # One fused (bblk, 2*HWp) x (2*HWp, HWp) matmul replaces two skinny
        # conv matmuls plus a VPU add.
        conv = jnp.dot(pooled, k_ref[...].astype(jnp.float32),
                       preferred_element_type=jnp.float32)       # (bblk, HWp)
        sa = jax.nn.sigmoid(conv).astype(ew_dtype)

        o_ref[...] = (x1_ref[...] * sa[:, None, :]).astype(o_ref.dtype)

    return kernel


# --------------------------------------------------------------------------
# Host-side helpers
# --------------------------------------------------------------------------
def build_conv_operator(w_sp, H, W, HWp, C):
    """Dense stacked operator K of shape (2*HWp, HWp) such that
       concat([channel_sum, channel_max], -1) @ K
    equals the 7x7 'same' cross-correlation of [channel_mean, channel_max]
    (rows [0:HWp] carry the avg-channel taps pre-scaled by 1/C)."""
    KS = w_sp.shape[-1]
    P = (KS - 1) // 2
    K = np.zeros((2, HWp, HWp), np.float32)
    ys, xs = np.meshgrid(np.arange(H), np.arange(W), indexing="ij")
    out_idx = (ys * W + xs).ravel()
    for c in range(2):
        for kh in range(KS):
            for kw in range(KS):
                iy = ys + kh - P
                ix = xs + kw - P
                valid = ((iy >= 0) & (iy < H) & (ix >= 0) & (ix < W)).ravel()
                in_idx = (np.clip(iy, 0, H - 1) * W
                          + np.clip(ix, 0, W - 1)).ravel()
                K[c, in_idx[valid], out_idx[valid]] += w_sp[c, kh, kw]
    K[0] *= 1.0 / C          # fold the channel-mean denominator into avg half
    return jnp.asarray(K.reshape(2 * HWp, HWp))


def _device_kind():
    devs = jax.devices()
    return devs[0].device_kind.lower() if devs else ""


def _elementwise_dtype(x_dtype, kind):
    # bf16 VALU/EUP exist on v6e/v7x; v5e must compute elementwise in f32.
    if x_dtype == jnp.bfloat16 and any(t in kind for t in ("v6", "v7", "tpu7")):
        return jnp.bfloat16
    return jnp.float32


def _pick_block_b(B, ew_dtype, kind):
    # v7x: 2 TensorCores/chip -> keep 2 grid steps so the 'parallel' batch axis
    # shards one step per core.  v5e/v6e: 1 TC -> a single fat step.
    two_tc = any(t in kind for t in ("v7", "tpu7"))
    target_steps = 2 if two_tc else 1
    # vreg-pressure cap for the (bblk, C, HW) elementwise path.
    cap = 8 if ew_dtype == jnp.bfloat16 else 4
    bblk = max(1, min(cap, pl.cdiv(B, target_steps)))
    while B % bblk:                      # grid = (B // bblk,)
        bblk -= 1
    return bblk


def _cbam_call(x2, w1t, w2t, K, bblk, hw_real, ew_dtype, single_buffer_consts):
    B, C, HWp = x2.shape
    Cr = w1t.shape[1]

    def const_spec(shape):
        n = len(shape)
        idx = lambda b, _n=n: (0,) * _n
        if single_buffer_consts:
            # Grid-invariant operands: one VMEM buffer is enough (capacity lever).
            return pl.BlockSpec(shape, idx, pipeline_mode=pl.Buffered(1))
        return pl.BlockSpec(shape, idx)

    kernel = make_cbam_kernel(hw_real, HWp, ew_dtype, bblk)

    # Rough VMEM estimate; only raise the scoped limit if we actually need it.
    blk_bytes = bblk * C * HWp * x2.dtype.itemsize
    const_bytes = (w1t.size + w2t.size + K.size) * 4
    const_mult = 1 if single_buffer_consts else 2
    scratch_bytes = bblk * C * HWp * jnp.dtype(ew_dtype).itemsize
    est = 4 * blk_bytes + const_mult * const_bytes + scratch_bytes
    cp_kwargs = dict(dimension_semantics=("parallel",))
    if est > (30 << 20):
        cp_kwargs["vmem_limit_bytes"] = min(int(est * 1.25), 100 << 20)

    return pl.pallas_call(
        kernel,
        out_shape=jax.ShapeDtypeStruct((B, C, HWp), x2.dtype),
        grid_spec=pltpu.PrefetchScalarGridSpec(
            num_scalar_prefetch=0,
            grid=(B // bblk,),
            in_specs=[
                pl.BlockSpec((bblk, C, HWp), lambda b: (b, 0, 0)),
                const_spec((C, Cr)),           # fc1.weight.T
                const_spec((Cr, C)),           # fc2.weight.T
                const_spec((2 * HWp, HWp)),    # stacked dense conv operator
            ],
            out_specs=pl.BlockSpec((bblk, C, HWp), lambda b: (b, 0, 0)),
            scratch_shapes=[pltpu.VMEM((bblk, C, HWp), ew_dtype)],
        ),
        compiler_params=pltpu.CompilerParams(**cp_kwargs),
    )(x2, w1t, w2t, K)


def cbam_pallas(x, w1, w2, w_sp):
    """x: (B, C, H, W); w1: (Cr, C) fc1.weight; w2: (C, Cr) fc2.weight;
    w_sp: (2, 7, 7) spatial conv weight (out-channel squeezed)."""
    B, C, H, W = x.shape
    HW = H * W
    HWp = pl.cdiv(HW, 128) * 128          # lane-dense trailing axis

    kind = _device_kind()
    ew_dtype = _elementwise_dtype(x.dtype, kind)
    bblk = _pick_block_b(B, ew_dtype, kind)

    x2 = x.reshape(B, C, HW)
    if HWp != HW:
        # Zero-pad the lane axis; the kernel corrects the mean denominator and
        # masks padded lanes out of the max pool.
        x2 = jnp.pad(x2, ((0, 0), (0, 0), (0, HWp - HW)))

    w1t = jnp.asarray(w1).T.astype(jnp.float32)       # (C, Cr)
    w2t = jnp.asarray(w2).T.astype(jnp.float32)       # (Cr, C)
    K = build_conv_operator(np.asarray(w_sp, np.float32), H, W, HWp, C)
    # TODO(synk): for large feature maps the dense (2*HWp, HWp) operator is
    # O(HW^2) and exceeds v7x's 64 MiB VMEM well before v5e/v6e; switch to a
    # pltpu.roll-based shifted-add 7x7 conv (O(49*HW)) and/or bf16 K there.

    k_bytes = K.size * K.dtype.itemsize
    single_buffer = k_bytes > (4 << 20)   # only a capacity lever; skip when tiny

    try:
        out = _cbam_call(x2, w1t, w2t, K, bblk, HW, ew_dtype, single_buffer)
    except (TypeError, ValueError, NotImplementedError,
            pltpu.LoweringException):
        if not single_buffer:
            raise
        # This build rejects pl.Buffered(1); fall back to default buffering.
        out = _cbam_call(x2, w1t, w2t, K, bblk, HW, ew_dtype, False)

    if HWp != HW:
        out = out[:, :, :HW]
    return out.reshape(B, C, H, W)


# --------------------------------------------------------------------------
# Pure-JAX reference (matches the PyTorch module)
# --------------------------------------------------------------------------
def cbam_ref(x, w1, w2, w_sp):
    avg = x.mean(axis=(2, 3))                 # (B, C)
    mx = x.max(axis=(2, 3))                   # (B, C)

    def fc(v):
        return jnp.maximum(v @ w1.T, 0.0) @ w2.T

    ca = jax.nn.sigmoid(fc(avg) + fc(mx))[:, :, None, None]
    x1 = x * ca

    avg_s = x1.mean(axis=1, keepdims=True)
    max_s = x1.max(axis=1, keepdims=True)
    sp_in = jnp.concatenate([avg_s, max_s], axis=1)       # (B, 2, H, W)
    conv = jax.lax.conv_general_dilated(
        sp_in, w_sp[None], window_strides=(1, 1),
        padding=[(3, 3), (3, 3)],
        dimension_numbers=("NCHW", "OIHW", "NCHW"))
    sa = jax.nn.sigmoid(conv)
    return x1 * sa


if __name__ == "__main__":
    B, C, H, W = 2, 32, 16, 16
    reduction = 16
    Cr = C // reduction

    key = jax.random.PRNGKey(0)
    kx, k1, k2, k3 = jax.random.split(key, 4)

    x = jax.random.normal(kx, (B, C, H, W), dtype=jnp.float32)
    w1 = 0.2 * jax.random.normal(k1, (Cr, C), dtype=jnp.float32)      # fc1 (no bias)
    w2 = 0.2 * jax.random.normal(k2, (C, Cr), dtype=jnp.float32)      # fc2 (no bias)
    w_sp = 0.1 * jax.random.normal(k3, (2, 7, 7), dtype=jnp.float32)  # conv weight

    out = cbam_pallas(x, w1, w2, w_sp)
    out = jax.block_until_ready(out)

    ref = cbam_ref(x, w1, w2, w_sp)
    np.testing.assert_allclose(np.asarray(out), np.asarray(ref),
                               rtol=1e-4, atol=1e-5)
    print("KERNEL_OK")
</pallas_src>

<mosaic_0001>
module attributes {stable_mosaic.version = 11 : i64} {
  func.func @kernel(%arg0: i32, %arg1: memref<2x32x256xf32, #tpu.memory_space<vmem>>, %arg2: memref<32x2xf32, #tpu.memory_space<vmem>>, %arg3: memref<2x32xf32, #tpu.memory_space<vmem>>, %arg4: memref<512x256xf32, #tpu.memory_space<vmem>>, %arg5: memref<2x32x256xf32, #tpu.memory_space<vmem>>, %arg6: memref<2x32x256xf32, #tpu.memory_space<vmem>>) attributes {dimension_semantics = [#tpu.dimension_semantics<parallel>], iteration_bounds = array<i64: 1>, scalar_prefetch = 0 : i64, scratch_operands = 1 : i64, tpu.core_type = #tpu.core_type<tc>, window_params = [{transform_indices = @transform_0, window_bounds = array<i64: 2, 32, 256>}, {pipeline_mode = #tpu.pipeline_mode<synchronous>, transform_indices = @transform_1, window_bounds = array<i64: 32, 2>}, {pipeline_mode = #tpu.pipeline_mode<synchronous>, transform_indices = @transform_2, window_bounds = array<i64: 2, 32>}, {pipeline_mode = #tpu.pipeline_mode<synchronous>, transform_indices = @transform_3, window_bounds = array<i64: 512, 256>}, {transform_indices = @transform_4, window_bounds = array<i64: 2, 32, 256>}]} {
    %c0 = arith.constant 0 : index
    %c0_0 = arith.constant 0 : index
    %c0_1 = arith.constant 0 : index
    %0 = vector.load %arg1[%c0, %c0_0, %c0_1] : memref<2x32x256xf32, #tpu.memory_space<vmem>>, vector<2x32x256xf32>
    %cst = arith.constant dense<0.000000e+00> : vector<2x32xf32>
    %1 = vector.multi_reduction <add>, %0, %cst [2] : vector<2x32x256xf32> to vector<2x32xf32>
    %cst_2 = arith.constant dense<0xFF800000> : vector<2x32xf32>
    %2 = vector.multi_reduction <maximumf>, %0, %cst_2 [2] : vector<2x32x256xf32> to vector<2x32xf32>
    %cst_3 = arith.constant 3.906250e-03 : f32
    %3 = vector.broadcast %cst_3 : f32 to vector<2x32xf32>
    %4 = arith.mulf %1, %3 : vector<2x32xf32>
    %c0_4 = arith.constant 0 : index
    %c0_5 = arith.constant 0 : index
    %5 = vector.load %arg2[%c0_4, %c0_5] : memref<32x2xf32, #tpu.memory_space<vmem>>, vector<32x2xf32>
    %c0_6 = arith.constant 0 : index
    %c0_7 = arith.constant 0 : index
    %6 = vector.load %arg3[%c0_6, %c0_7] : memref<2x32xf32, #tpu.memory_space<vmem>>, vector<2x32xf32>
    %7 = tpu.concatenate %4, %2 in 0 : vector<2x32xf32>, vector<2x32xf32> -> vector<4x32xf32>
    %cst_8 = arith.constant dense<0.000000e+00> : vector<4x2xf32>
    %8 = tpu.matmul %7, %5, %cst_8 {dimension_numbers = #tpu.dot_dimension_numbers<[1], [0], [0], [1], [0, 0, 1, 1], [], []>} : vector<4x32xf32>, vector<32x2xf32>, vector<4x2xf32> -> vector<4x2xf32>
    %cst_9 = arith.constant 0.000000e+00 : f32
    %9 = vector.broadcast %cst_9 : f32 to vector<4x2xf32>
    %10 = arith.maximumf %8, %9 : vector<4x2xf32>
    %cst_10 = arith.constant dense<0.000000e+00> : vector<4x32xf32>
    %11 = tpu.matmul %10, %6, %cst_10 {dimension_numbers = #tpu.dot_dimension_numbers<[1], [0], [0], [1], [0, 0, 1, 1], [], []>} : vector<4x2xf32>, vector<2x32xf32>, vector<4x32xf32> -> vector<4x32xf32>
    %12 = vector.extract_strided_slice %11 {offsets = [0, 0], sizes = [2, 32], strides = [1, 1]} : vector<4x32xf32> to vector<2x32xf32>
    %13 = vector.extract_strided_slice %11 {offsets = [2, 0], sizes = [2, 32], strides = [1, 1]} : vector<4x32xf32> to vector<2x32xf32>
    %14 = arith.addf %12, %13 : vector<2x32xf32>
    %15 = arith.negf %14 : vector<2x32xf32>
    %16 = math.exp %15 : vector<2x32xf32>
    %cst_11 = arith.constant 1.000000e+00 : f32
    %17 = vector.broadcast %cst_11 : f32 to vector<2x32xf32>
    %18 = arith.addf %17, %16 : vector<2x32xf32>
    %19 = arith.divf %17, %18 : vector<2x32xf32>
    %20 = vector.shape_cast %19 : vector<2x32xf32> to vector<2x32x1xf32>
    %21 = vector.broadcast %20 : vector<2x32x1xf32> to vector<2x32x256xf32>
    %22 = arith.mulf %0, %21 : vector<2x32x256xf32>
    %c0_12 = arith.constant 0 : index
    %c0_13 = arith.constant 0 : index
    %c0_14 = arith.constant 0 : index
    %23 = vector.load %arg6[%c0_12, %c0_13, %c0_14] : memref<2x32x256xf32, #tpu.memory_space<vmem>>, vector<2x32x256xf32>
    tpu.vector_store %arg6[%c0_12, %c0_13, %c0_14], %22 {strides = array<i32>} : memref<2x32x256xf32, #tpu.memory_space<vmem>>, vector<2x32x256xf32>,
    %cst_15 = arith.constant dense<0.000000e+00> : vector<2x256xf32>
    %24 = vector.multi_reduction <add>, %22, %cst_15 [1] : vector<2x32x256xf32> to vector<2x256xf32>
    %cst_16 = arith.constant dense<0xFF800000> : vector<2x256xf32>
    %25 = vector.multi_reduction <maximumf>, %22, %cst_16 [1] : vector<2x32x256xf32> to vector<2x256xf32>
    %26 = tpu.concatenate %24, %25 in 1 : vector<2x256xf32>, vector<2x256xf32> -> vector<2x512xf32>
    %c0_17 = arith.constant 0 : index
    %c0_18 = arith.constant 0 : index
    %27 = vector.load %arg4[%c0_17, %c0_18] : memref<512x256xf32, #tpu.memory_space<vmem>>, vector<512x256xf32>
    %cst_19 = arith.constant dense<0.000000e+00> : vector<2x256xf32>
    %28 = tpu.matmul %26, %27, %cst_19 {dimension_numbers = #tpu.dot_dimension_numbers<[1], [0], [0], [1], [0, 0, 1, 1], [], []>} : vector<2x512xf32>, vector<512x256xf32>, vector<2x256xf32> -> vector<2x256xf32>
    %29 = arith.negf %28 : vector<2x256xf32>
    %30 = math.exp %29 : vector<2x256xf32>
    %cst_20 = arith.constant 1.000000e+00 : f32
    %31 = vector.broadcast %cst_20 : f32 to vector<2x256xf32>
    %32 = arith.addf %31, %30 : vector<2x256xf32>
    %33 = arith.divf %31, %32 : vector<2x256xf32>
    %c0_21 = arith.constant 0 : index
    %c0_22 = arith.constant 0 : index
    %c0_23 = arith.constant 0 : index
    %34 = vector.load %arg6[%c0_21, %c0_22, %c0_23] : memref<2x32x256xf32, #tpu.memory_space<vmem>>, vector<2x32x256xf32>
    %35 = vector.shape_cast %33 : vector<2x256xf32> to vector<2x1x256xf32>
    %36 = vector.broadcast %35 : vector<2x1x256xf32> to vector<2x32x256xf32>
    %37 = arith.mulf %34, %36 : vector<2x32x256xf32>
    %c0_24 = arith.constant 0 : index
    %c0_25 = arith.constant 0 : index
    %c0_26 = arith.constant 0 : index
    %38 = vector.load %arg5[%c0_24, %c0_25, %c0_26] : memref<2x32x256xf32, #tpu.memory_space<vmem>>, vector<2x32x256xf32>
    tpu.vector_store %arg5[%c0_24, %c0_25, %c0_26], %37 {strides = array<i32>} : memref<2x32x256xf32, #tpu.memory_space<vmem>>, vector<2x32x256xf32>,
    return
  }
  func.func @transform_0(%arg0: i32) -> (i32, i32, i32) {
    %c0_i32 = arith.constant 0 : i32
    %c0_i32_0 = arith.constant 0 : i32
    %c0_i32_1 = arith.constant 0 : i32
    return %arg0, %c0_i32, %c0_i32_0 : i32, i32, i32
  }
  func.func @transform_1(%arg0: i32) -> (i32, i32) {
    %c0_i32 = arith.constant 0 : i32
    %c0_i32_0 = arith.constant 0 : i32
    %c0_i32_1 = arith.constant 0 : i32
    return %c0_i32, %c0_i32_0 : i32, i32
  }
  func.func @transform_2(%arg0: i32) -> (i32, i32) {
    %c0_i32 = arith.constant 0 : i32
    %c0_i32_0 = arith.constant 0 : i32
    %c0_i32_1 = arith.constant 0 : i32
    return %c0_i32, %c0_i32_0 : i32, i32
  }
  func.func @transform_3(%arg0: i32) -> (i32, i32) {
    %c0_i32 = arith.constant 0 : i32
    %c0_i32_0 = arith.constant 0 : i32
    %c0_i32_1 = arith.constant 0 : i32
    return %c0_i32, %c0_i32_0 : i32, i32
  }
  func.func @transform_4(%arg0: i32) -> (i32, i32, i32) {
    %c0_i32 = arith.constant 0 : i32
    %c0_i32_0 = arith.constant 0 : i32
    %c0_i32_1 = arith.constant 0 : i32
    return %arg0, %c0_i32, %c0_i32_0 : i32, i32, i32
  }
}

</mosaic_0001>

<bundles_post_ra>
// kernel: tpu_custom_call.1
= control target key start
LH: loop header
LB: loop body
LE: loop exit
PB: predicated region body
PF: predicated region fallthrough
CT: control target
= control target key end

     0   :  { %9 = vsyncpa [#allocation4], 0  ;;  %s1499_s0 = inlined_call_operand.hbm [shape: f32[2,32,256], index: 0, kind: input, shape index: {}]   ;;  %s1500_s1 = inlined_call_operand.vmem [shape: f32[32,2], index: 1, kind: input, shape index: {}]   ;;  %s1501_s2 = inlined_call_operand.vmem [shape: f32[2,32], index: 2, kind: input, shape index: {}]   ;;  %s1502_s3 = inlined_call_operand.hbm [shape: f32[512,256], index: 3, kind: input, shape index: {}]   ;;  %s1503_s4 = inlined_call_operand.hbm [shape: f32[2,32,256], index: 4, kind: output, shape index: {}]  }
   0x1   :  { %10 = vsyncpa [#allocation7], 0 }
   0x2   :  { %11 = vsyncpa [#allocation5], 0  ;;  %s1202_s15 = smov [#allocation3]   ;;  %s1130_s19 = scalar_lea.hbm %s1499_s0, 2048 }
   0x3   :  { %s17_s16 = sshll.u32 %s1202_s15, 4  ;;  %p1131_p0 = scmp.ne.s32.totalorder %s1499_s0, %s1130_s19  ;;  %s18_s16 = int_to_ptr.vmem [resolvable:$true] %s17_s16 }
   0x4   :  { %p1134_p1 = scmp.lt.u32.totalorder %s1130_s19, %s1499_s0 }
   0x6   :  { %p1136_p2 = pnand %p1134_p1, %p1131_p0 }
   0x8   :  { %1139 = shalt.err (!%p1136_p2)
}
   0x9   :  { %s1140_s24 = scalar_lea.vmem %s18_s16, 2048  ;;  %p1145_p4 = scmp.lt.s32.totalorder %s18_s16, %s18_s16 }
   0xa   :  { %p1141_p3 = scmp.ne.s32.totalorder %s18_s16, %s1140_s24  ;;  %p1146_p5 = scmp.lt.s32.totalorder %s1140_s24, %s1140_s24 }
   0xc   :  { %p1147_p6 = por %p1146_p5, %p1145_p4 }
   0xe   :  { %p1148_p7 = pnand %p1147_p6, %p1141_p3 }
  0x10   :  { %1151 = shalt.err (!%p1148_p7)
}
  0x11   :  { %s1203_s25 = smov 256   ;;  %s1204_s26 = smov 16  }
  0x12   :  { %23 = dma.hbm_to_vmem [thread:$0]  %s1499_s0, 2048, %s18_s16, [#allocation4], %s1203_s25, %s1203_s25, %s1204_s26  }
  0x13   :  { %s1205_s29 = smov [#allocation6]   ;;  %s1152_s7 = scalar_lea.hbm %s1502_s3, 16384 }
  0x14   :  { %s33_s30 = sshll.u32 %s1205_s29, 4  ;;  %p1153_p8 = scmp.ne.s32.totalorder %s1502_s3, %s1152_s7  ;;  %s34_s30 = int_to_ptr.vmem [resolvable:$true] %s33_s30 }
  0x15   :  { %p1156_p9 = scmp.lt.u32.totalorder %s1152_s7, %s1502_s3 }
  0x17   :  { %p1158_p10 = pnand %p1156_p9, %p1153_p8 }
  0x19   :  { %1161 = shalt.err (!%p1158_p10)
}
  0x1a   :  { %s1162_s12 = scalar_lea.vmem %s34_s30, 16384  ;;  %p1167_p12 = scmp.lt.s32.totalorder %s34_s30, %s34_s30 }
  0x1b   :  { %p1163_p11 = scmp.ne.s32.totalorder %s34_s30, %s1162_s12  ;;  %p1168_p13 = scmp.lt.s32.totalorder %s1162_s12, %s1162_s12 }
  0x1d   :  { %p1169_p0 = por %p1168_p13, %p1167_p12 }
  0x1f   :  { %p1170_p1 = pnand %p1169_p0, %p1163_p11 }
  0x21   :  { %1173 = shalt.err (!%p1170_p1)
}
  0x22   :  { %39 = dma.hbm_to_vmem [thread:$0]  %s1502_s3, 16384, %s34_s30, [#allocation7], %s1203_s25, %s1203_s25, %s1204_s26  }
  0x23   :  { %1196 = dma.done.wait [#allocation4], 2048  }
  0x24   :  { %1197 = vsyncadd [#allocation4], 4294965248 }
  0x25   :  { %1198 = dma.done.wait [#allocation7], 16384  }
  0x26   :  { %1199 = vsyncadd [#allocation7], 4294950912  ;;  %v1266_v0 = vld [vmem:[#allocation3 + $0x40] sm:$0xff]  ;;  %v1268_v1 = vld [vmem:[#allocation3 + $0x48] sm:$0xff]  ;;  %v1206_v35 = vmov 0.0|0.0   ;;  %vm1207_vm0 = vmmov 0   ;;  %v131_v45 = vlaneseq }
  0x27   :  { %v1270_v2 = vld [vmem:[#allocation3] sm:$0xff]  ;;  %v74_v3 = vadd.f32 %v1268_v1, %v1266_v0  ;;  %v1274_v4 = vld [vmem:[#allocation3 + $0x8] sm:$0xff]  ;;  %v1276_v5 = vld [vmem:[#allocation3 + $0x50] sm:$0xff]  ;;  %v98_v27 = vmax.f32 %v1266_v0, %v1268_v1  ;;  %973 = vmatprep.subr.bf16.mxu0 %v1206_v35  ;;  %v1208_v39 = vmov 0.0   ;;  %vm142_vm1 = vcmask 130112  }
  0x28   :  { %v1278_v6 = vld [vmem:[#allocation3 + $0x58] sm:$0xff]  ;;  %v62_v7 = vadd.f32 %v1274_v4, %v1270_v2  ;;  %v1282_v8 = vld [vmem:[#allocation3 + $0x10] sm:$0xff]  ;;  %v1290_v12 = vld [vmem:[#allocation3 + $0x60] sm:$0xff]  ;;  %v86_v25 = vmax.f32 %v1270_v2, %v1274_v4  ;;  %965 = vmatprep.mubr.msk.f32.mxu0 %vm1207_vm0, %v1208_v39  ;;  %968 = vmatprep.subr.mxu1 %v1208_v39  ;;  %v132_v48 = vand.u32 127, %v131_v45  ;;  %v1342_v50 = vshrl.u32 %v131_v45, 7 }
  0x29   :  { %v1284_v9 = vld [vmem:[#allocation3 + $0x18] sm:$0xff]  ;;  %75 = vadd.xlane.f32.xlu1 %v74_v3  ;;  %v77_v10 = vadd.f32 %v1278_v6, %v1276_v5  ;;  %v1292_v13 = vld [vmem:[#allocation3 + $0x68] sm:$0xff]  ;;  %v1294_v14 = vld [vmem:[#allocation3 + $0x20] sm:$0xff]  ;;  %v101_v26 = vmax.f32 %v1276_v5, %v1278_v6  ;;  %970 = vmatprep.mubr.msk.f32.mxu1 %vm1207_vm0, %v1208_v39  ;;  %vm149_vm2 = vcmask 195712   ;;  %vm156_vm3 = vcmask 261312  }
  0x2a   :  { %63 = vadd.xlane.f32.xlu0 %v62_v7  ;;  %v65_v11 = vadd.f32 %v1284_v9, %v1282_v8  ;;  %v1296_v15 = vld [vmem:[#allocation3 + $0x28] sm:$0xff]  ;;  %v80_v16 = vadd.f32 %v1292_v13, %v1290_v12  ;;  %v1302_v18 = vld [vmem:[#allocation3 + $0x70] sm:$0xff]  ;;  %v1304_v19 = vld [vmem:[#allocation3 + $0x78] sm:$0xff]  ;;  %v89_v24 = vmax.f32 %v1282_v8, %v1284_v9  ;;  %v104_v28 = vmax.f32 %v1290_v12, %v1292_v13 }
  0x2b   :  { %v68_v17 = vadd.f32 %v1296_v15, %v1294_v14  ;;  %v1306_v20 = vld [vmem:[#allocation3 + $0x30] sm:$0xff]  ;;  %v1308_v21 = vld [vmem:[#allocation3 + $0x38] sm:$0xff]  ;;  %v83_v22 = vadd.f32 %v1304_v19, %v1302_v18  ;;  %v92_v29 = vmax.f32 %v1294_v14, %v1296_v15  ;;  %v107_v30 = vmax.f32 %v1302_v18, %v1304_v19  ;;  %v118_v32 = vld [vmem:[%s1500_s1] sm:$0xff] }
  0x2c   :  { %v71_v23 = vadd.f32 %v1308_v21, %v1306_v20  ;;  %v95_v31 = vmax.f32 %v1306_v20, %v1308_v21  ;;  %v119_v33 = vld [vmem:[%s1500_s1 + $0x8] sm:$0xff]  ;;  %v120_v36 = vld [vmem:[%s1500_s1 + $0x10] sm:$0xff]  ;;  %v121_v37 = vld [vmem:[%s1500_s1 + $0x18] sm:$0xff]  ;;  %v137_v51 = vadd.s32 4294967288, %v132_v48  ;;  %v144_v52 = vadd.s32 4294967280, %v132_v48 }
  0x2d   :  { %78 = vadd.xlane.f32.xlu1 %v77_v10  ;;  %v974_v34 = vpack.c.bf16 %v119_v33, %v118_v32  ;;  %v977_v38 = vpack.c.bf16 %v121_v37, %v120_v36  ;;  %v151_v54 = vadd.s32 4294967272, %v132_v48  ;;  %v135_v56 = vsub.s32 %v132_v48, %v1342_v50 }
  0x2e   :  { %66 = vadd.xlane.f32.xlu0 %v65_v11  ;;  %v140_v57 = vsub.s32 %v137_v51, %v1342_v50  ;;  %v147_v59 = vsub.s32 %v144_v52, %v1342_v50  ;;  %vm177_vm4 = vcmask 1041409   ;;  %vm226_vm5 = vcmask 1043459  }
  0x2f   :  { %975 = vmatpush3.bf16.msra.mxu0 %v974_v34  ;;  %v154_v10 = vsub.s32 %v151_v54, %v1342_v50  ;;  %vm229_vm6 = vcmask 1041408   ;;  %vm231_vm7 = vcmask 261120   ;;  %vm306_vm8 = vcmask 15360  }
  0x30   :  { %976 = vmatprep.subr.bf16.mxu0 %v1206_v35 }
  0x31   :  { %81 = vadd.xlane.f32.xlu1 %v80_v16 }
  0x32   :  { %69 = vadd.xlane.f32.xlu0 %v68_v17 }
  0x33   :  { %978 = vmatpush3.bf16.msra.mxu0 %v977_v38 }
  0x35   :  { %84 = vadd.xlane.f32.xlu1 %v83_v22 }
  0x36   :  { %72 = vadd.xlane.f32.xlu0 %v71_v23 }
  0x39   :  { %90 = vmax.xlane.f32.xlu1 %v89_v24 }
  0x3a   :  { %87 = vmax.xlane.f32.xlu0 %v86_v25 }
  0x3d   :  { %102 = vmax.xlane.f32.xlu1 %v101_v26 }
  0x3e   :  { %99 = vmax.xlane.f32.xlu0 %v98_v27 }
  0x41   :  { %105 = vmax.xlane.f32.xlu1 %v104_v28 }
  0x42   :  { %93 = vmax.xlane.f32.xlu0 %v92_v29 }
  0x45   :  { %108 = vmax.xlane.f32.xlu1 %v107_v30 }
  0x46   :  { %96 = vmax.xlane.f32.xlu0 %v95_v31 }
  0xb6   :  { %v76_v40 = vpop.xlane.xlu1 %75 }
  0xb7   :  { %v64_v41 = vpop.xlane.xlu0 %63  ;;  %v114_v60 = vmul.f32 0.00390625, %v76_v40 }
  0xb8   :  { %v110_v61 = vmul.f32 0.00390625, %v64_v41 }
  0xb9   :  { %v161_v23 = vrot.slane %v114_v60, %v135_v56 }
  0xba   :  { %v79_v42 = vpop.xlane.xlu1 %78  ;;  %v136_v24 = vrot.slane %v110_v61, %v135_v56 }
  0xbb   :  { %v67_v43 = vpop.xlane.xlu0 %66  ;;  %v115_v58 = vmul.f32 0.00390625, %v79_v42 }
  0xbc   :  { %v111_v62 = vmul.f32 0.00390625, %v67_v43 }
  0xbd   :  { %v165_v22 = vrot.slane %v115_v58, %v140_v57  ;;  %v122_v58 = vld [vmem:[%s1501_s2] sm:$0x3]  ;;  %s1210_s2 = smov [#allocation8]  }
  0xbe   :  { %v82_v44 = vpop.xlane.xlu1 %81  ;;  %v141_v25 = vrot.slane %v111_v62, %v140_v57  ;;  %969 = vmatpush3.msk.msra.mxu1 %vm229_vm6, %v122_v58  ;;  %v552_v62 = vld [vmem:[#allocation6 + $0x8] sm:$0xff]  ;;  %s931_s22 = sshll.u32 %s1210_s2, 4  ;;  %s932_s22 = int_to_ptr.vmem [resolvable:$true] %s931_s22 }
  0xbf   :  { %v70_v46 = vpop.xlane.xlu0 %69  ;;  %v116_v63 = vmul.f32 0.00390625, %v82_v44  ;;  %v166_v37 = vsel %vm142_vm1, %v165_v22, %v161_v23  ;;  %v615_v23 = vld [vmem:[#allocation6 + $0x200] sm:$0xff]  ;;  %s1174_s23 = scalar_lea.vmem %s932_s22, 2048  ;;  %p1179_p3 = scmp.lt.s32.totalorder %s932_s22, %s932_s22 }
  0xc0   :  { %v112_v7 = vmul.f32 0.00390625, %v70_v46  ;;  %v143_v39 = vsel %vm142_vm1, %v141_v25, %v136_v24  ;;  %v617_v24 = vld [vmem:[#allocation6 + $0x210] sm:$0xff]  ;;  %v556_v25 = vld [vmem:[#allocation6 + $0x28] sm:$0xff]  ;;  %p1175_p2 = scmp.ne.s32.totalorder %s932_s22, %s1174_s23  ;;  %p1180_p4 = scmp.lt.s32.totalorder %s1174_s23, %s1174_s23 }
  0xc1   :  { %v170_v26 = vrot.slane %v116_v63, %v147_v59  ;;  %v554_v63 = vld [vmem:[#allocation6 + $0x18] sm:$0xff] }
  0xc2   :  { %v85_v47 = vpop.xlane.xlu1 %84  ;;  %v148_v28 = vrot.slane %v112_v7, %v147_v59  ;;  %v979_v7 = vpack.c.bf16 %v554_v63, %v552_v62  ;;  %v570_v62 = vld [vmem:[#allocation6 + $0x98] sm:$0xff]  ;;  %v632_v63 = vld [vmem:[#allocation6 + $0x288] sm:$0xff]  ;;  %p1181_p5 = por %p1180_p4, %p1179_p3 }
  0xc3   :  { %v73_v49 = vpop.xlane.xlu0 %72  ;;  %v117_v11 = vmul.f32 0.00390625, %v85_v47  ;;  %v171_v40 = vsel %vm149_vm2, %v170_v26, %v166_v37  ;;  %v1045_v26 = vpack.c.bf16 %v617_v24, %v615_v23  ;;  %v560_v37 = vld [vmem:[#allocation6 + $0x48] sm:$0xff]  ;;  %v633_v24 = vld [vmem:[#allocation6 + $0x290] sm:$0xff] }
  0xc4   :  { %v113_v17 = vmul.f32 0.00390625, %v73_v49  ;;  %v150_v42 = vsel %vm149_vm2, %v148_v28, %v143_v39  ;;  %980 = vmatprep.subr.bf16.mxu0 %v979_v7  ;;  %v620_v28 = vld [vmem:[#allocation6 + $0x228] sm:$0xff]  ;;  %p1182_p6 = pnand %p1181_p5, %p1175_p2 }
  0xc5   :  { %v175_v29 = vrot.slane %v117_v11, %v154_v10  ;;  %v551_v11 = vld [vmem:[#allocation6] sm:$0xff] }
  0xc6   :  { %v91_v53 = vpop.xlane.xlu1 %90  ;;  %v155_v33 = vrot.slane %v113_v17, %v154_v10 }
  0xc7   :  { %v88_v55 = vpop.xlane.xlu0 %87  ;;  %v195_v34 = vrot.slane %v91_v53, %v140_v57  ;;  %v176_v43 = vsel %vm156_vm3, %v175_v29, %v171_v40  ;;  %v622_v29 = vld [vmem:[#allocation6 + $0x238] sm:$0xff] }
  0xc8   :  { %v191_v35 = vrot.slane %v88_v55, %v135_v56  ;;  %v157_v47 = vsel %vm156_vm3, %v155_v33, %v150_v42  ;;  %v557_v33 = vld [vmem:[#allocation6 + $0x30] sm:$0xff]  ;;  %v626_v42 = vld [vmem:[#allocation6 + $0x258] sm:$0xff] }
  0xc9   :  { %v178_v55 = vsel %vm177_vm4, %v176_v43, %v157_v47  ;;  %v559_v43 = vld [vmem:[#allocation6 + $0x40] sm:$0xff]  ;;  %v625_v47 = vld [vmem:[#allocation6 + $0x250] sm:$0xff] }
  0xca   :  { %v103_v3 = vpop.xlane.xlu1 %102  ;;  %v196_v48 = vsel %vm142_vm1, %v195_v34, %v191_v35  ;;  %v619_v34 = vld [vmem:[#allocation6 + $0x220] sm:$0xff] }
  0xcb   :  { %v100_v16 = vpop.xlane.xlu0 %99  ;;  %v214_v30 = vrot.slane %v103_v3, %v140_v57  ;;  %v616_v3 = vld [vmem:[#allocation6 + $0x208] sm:$0xff] }
  0xcc   :  { %v210_v31 = vrot.slane %v100_v16, %v135_v56  ;;  %v553_v16 = vld [vmem:[#allocation6 + $0x10] sm:$0xff] }
  0xcd   :  { %v981_v22 = vpack.c.bf16 %v553_v16, %v551_v11  ;;  %v567_v16 = vld [vmem:[#allocation6 + $0x80] sm:$0xff] }
  0xce   :  { %v106_v27 = vpop.xlane.xlu1 %105  ;;  %v215_v44 = vsel %vm142_vm1, %v214_v30, %v210_v31  ;;  %v1047_v31 = vpack.c.bf16 %v622_v29, %v620_v28  ;;  %v638_v28 = vld [vmem:[#allocation6 + $0x2b8] sm:$0xff] }
  0xcf   :  { %v94_v32 = vpop.xlane.xlu0 %93  ;;  %v219_v36 = vrot.slane %v106_v27, %v147_v59  ;;  %v558_v27 = vld [vmem:[#allocation6 + $0x38] sm:$0xff] }
  0xd0   :  { %v200_v38 = vrot.slane %v94_v32, %v147_v59  ;;  %v983_v30 = vpack.c.bf16 %v558_v27, %v556_v25  ;;  %v555_v32 = vld [vmem:[#allocation6 + $0x20] sm:$0xff]  ;;  %v572_v25 = vld [vmem:[#allocation6 + $0xa8] sm:$0xff] }
  0xd1   :  { %v220_v49 = vsel %vm149_vm2, %v219_v36, %v215_v44  ;;  %v985_v35 = vpack.c.bf16 %v557_v33, %v555_v32  ;;  %v621_v36 = vld [vmem:[#allocation6 + $0x230] sm:$0xff]  ;;  %v636_v27 = vld [vmem:[#allocation6 + $0x2a8] sm:$0xff]  ;;  %v571_v32 = vld [vmem:[#allocation6 + $0xa0] sm:$0xff] }
  0xd2   :  { %v109_v41 = vpop.xlane.xlu1 %108  ;;  %v201_v52 = vsel %vm149_vm2, %v200_v38, %v196_v48  ;;  %v562_v38 = vld [vmem:[#allocation6 + $0x58] sm:$0xff]  ;;  %v1049_v39 = vpack.c.bf16 %v621_v36, %v619_v34  ;;  %v573_v33 = vld [vmem:[#allocation6 + $0xb0] sm:$0xff]  ;;  %v635_v34 = vld [vmem:[#allocation6 + $0x2a0] sm:$0xff] }
  0xd3   :  { %v224_v45 = vrot.slane %v109_v41, %v154_v10  ;;  %v97_v46 = vpop.xlane.xlu0 %96  ;;  %v987_v40 = vpack.c.bf16 %v562_v38, %v560_v37  ;;  %v624_v41 = vld [vmem:[#allocation6 + $0x248] sm:$0xff]  ;;  %v637_v36 = vld [vmem:[#allocation6 + $0x2b0] sm:$0xff]  ;;  %v578_v38 = vld [vmem:[#allocation6 + $0xd8] sm:$0xff] }
  0xd4   :  { %v205_v51 = vrot.slane %v97_v46, %v154_v10  ;;  %v618_v10 = vld [vmem:[#allocation6 + $0x218] sm:$0xff]  ;;  %v1051_v44 = vpack.c.bf16 %v626_v42, %v624_v41  ;;  %v623_v46 = vld [vmem:[#allocation6 + $0x240] sm:$0xff]  ;;  %v576_v37 = vld [vmem:[#allocation6 + $0xc8] sm:$0xff]  ;;  %v1001_v41 = vpack.c.bf16 %v573_v33, %v571_v32  ;;  %v1065_v42 = vpack.c.bf16 %v637_v36, %v635_v34 }
  0xd5   :  { %v225_v53 = vsel %vm156_vm3, %v224_v45, %v220_v49  ;;  %v1043_v17 = vpack.c.bf16 %v618_v10, %v616_v3  ;;  %v561_v45 = vld [vmem:[#allocation6 + $0x50] sm:$0xff]  ;;  %v564_v49 = vld [vmem:[#allocation6 + $0x68] sm:$0xff]  ;;  %v634_v3 = vld [vmem:[#allocation6 + $0x298] sm:$0xff] }
  0xd6   :  { %v206_v54 = vsel %vm156_vm3, %v205_v51, %v201_v52  ;;  %v989_v48 = vpack.c.bf16 %v561_v45, %v559_v43  ;;  %v566_v51 = vld [vmem:[#allocation6 + $0x78] sm:$0xff]  ;;  %v628_v52 = vld [vmem:[#allocation6 + $0x268] sm:$0xff]  ;;  %v1059_v23 = vpack.c.bf16 %v634_v3, %v632_v63  ;;  %v1003_v43 = vpack.c.bf16 %v578_v38, %v576_v37  ;;  %v577_v45 = vld [vmem:[#allocation6 + $0xd0] sm:$0xff] }
  0xd7   :  { %v227_v56 = vsel %vm226_vm5, %v225_v53, %v206_v54  ;;  %1044 = vmatprep.subr.bf16.mxu1 %v1043_v17  ;;  %v1053_v53 = vpack.c.bf16 %v625_v47, %v623_v46  ;;  %v991_v54 = vpack.c.bf16 %v566_v51, %v564_v49  ;;  %v569_v17 = vld [vmem:[#allocation6 + $0x90] sm:$0xff]  ;;  %v639_v46 = vld [vmem:[#allocation6 + $0x2c0] sm:$0xff]  ;;  %v580_v49 = vld [vmem:[#allocation6 + $0xe8] sm:$0xff] }
  0xd8   :  { %v230_v57 = vsel %vm229_vm6, %v178_v55, %v227_v56  ;;  %v630_v55 = vld [vmem:[#allocation6 + $0x278] sm:$0xff]  ;;  %v563_v56 = vld [vmem:[#allocation6 + $0x60] sm:$0xff]  ;;  %v997_v29 = vpack.c.bf16 %v569_v17, %v567_v16  ;;  %v649_v33 = vld [vmem:[#allocation6 + $0x310] sm:$0xff] }
  0xd9   :  { %966 = vmatmul.mubr.msk.f32.vlgmr.msra.gmra.mrb[0].mxu0 %vm231_vm7, %v230_v57  ;;  %v565_v57 = vld [vmem:[#allocation6 + $0x70] sm:$0xff]  ;;  %v1055_v58 = vpack.c.bf16 %v630_v55, %v628_v52  ;;  %v582_v51 = vld [vmem:[#allocation6 + $0xf8] sm:$0xff]  ;;  %v644_v52 = vld [vmem:[#allocation6 + $0x2e8] sm:$0xff] }
  0xda   :  { %982 = vmatpush1.bf16.msra.mxu0 %v981_v22  ;;  %v993_v7 = vpack.c.bf16 %v565_v57, %v563_v56  ;;  %v631_v22 = vld [vmem:[#allocation6 + $0x280] sm:$0xff]  ;;  %v1007_v56 = vpack.c.bf16 %v582_v51, %v580_v49  ;;  %v590_v36 = vld [vmem:[#allocation6 + $0x138] sm:$0xff]  ;;  %v652_v37 = vld [vmem:[#allocation6 + $0x328] sm:$0xff] }
  0xdb   :  { %984 = vmatprep.subr.bf16.mxu0 %v983_v30  ;;  %v1061_v30 = vpack.c.bf16 %v633_v24, %v631_v22  ;;  %v579_v57 = vld [vmem:[#allocation6 + $0xe0] sm:$0xff]  ;;  %v586_v24 = vld [vmem:[#allocation6 + $0x118] sm:$0xff]  ;;  %v656_v51 = vld [vmem:[#allocation6 + $0x348] sm:$0xff] }
  0xdc   :  { %v647_v32 = vld [vmem:[#allocation6 + $0x300] sm:$0xff]  ;;  %v594_v49 = vld [vmem:[#allocation6 + $0x158] sm:$0xff] }
  0xdd   :  { %v1077_v34 = vpack.c.bf16 %v649_v33, %v647_v32  ;;  %v666_v33 = vld [vmem:[#allocation6 + $0x398] sm:$0xff] }
  0xde   :  { %986 = vmatpush1.bf16.msra.mxu0 %v985_v35  ;;  %v1063_v35 = vpack.c.bf16 %v638_v28, %v636_v27  ;;  %v650_v27 = vld [vmem:[#allocation6 + $0x318] sm:$0xff]  ;;  %v583_v28 = vld [vmem:[#allocation6 + $0x100] sm:$0xff] }
  0xdf   :  { %988 = vmatprep.subr.bf16.mxu0 %v987_v40  ;;  %v642_v40 = vld [vmem:[#allocation6 + $0x2d8] sm:$0xff] }
  0xe2   :  { %990 = vmatpush1.bf16.msra.mxu0 %v989_v48  ;;  %v641_v48 = vld [vmem:[#allocation6 + $0x2d0] sm:$0xff] }
  0xe3   :  { %992 = vmatprep.subr.bf16.mxu0 %v991_v54  ;;  %v1069_v55 = vpack.c.bf16 %v641_v48, %v639_v46  ;;  %v592_v48 = vld [vmem:[#allocation6 + $0x148] sm:$0xff] }
  0xe6   :  { %994 = vmatpush1.bf16.msra.mxu0 %v993_v7 }
 0x1ac   :  { %v301_v59 = vpop.f32.mrb[0].mxu0 }
 0x1ad   :  { %v305_v60 = vmax.f32 %v301_v59, 0.0  ;;  %v967_v61 = vpop.f32.mrb[1].mxu0  ;;  %v627_v59 = vld [vmem:[#allocation6 + $0x260] sm:$0xff] }
 0x1ae   :  { %v568_v61 = vld [vmem:[#allocation6 + $0x88] sm:$0xff] }
 0x1af   :  { %971 = vmatmul.mubr.msk.f32.vlgmr.msra.gmra.mrb[0].mxu1 %vm306_vm8, %v305_v60  ;;  %v629_v60 = vld [vmem:[#allocation6 + $0x270] sm:$0xff]  ;;  %v995_v11 = vpack.c.bf16 %v570_v62, %v568_v61 }
 0x1b0   :  { %1046 = vmatpush1.bf16.msra.mxu1 %v1045_v26  ;;  %v1057_v10 = vpack.c.bf16 %v629_v60, %v627_v59  ;;  %v574_v26 = vld [vmem:[#allocation6 + $0xb8] sm:$0xff]  ;;  %v643_v60 = vld [vmem:[#allocation6 + $0x2e0] sm:$0xff]  ;;  %v645_v61 = vld [vmem:[#allocation6 + $0x2f0] sm:$0xff] }
 0x1b1   :  { %1048 = vmatprep.subr.bf16.mxu1 %v1047_v31  ;;  %996 = vmatprep.subr.bf16.mxu0 %v995_v11  ;;  %v999_v31 = vpack.c.bf16 %v574_v26, %v572_v25  ;;  %v1073_v63 = vpack.c.bf16 %v645_v61, %v643_v60  ;;  %v648_v25 = vld [vmem:[#allocation6 + $0x308] sm:$0xff]  ;;  %v657_v60 = vld [vmem:[#allocation6 + $0x350] sm:$0xff] }
 0x1b2   :  { %998 = vmatpush1.bf16.msra.mxu0 %v997_v29  ;;  %v585_v29 = vld [vmem:[#allocation6 + $0x110] sm:$0xff] }
 0x1b3   :  { %1000 = vmatprep.subr.bf16.mxu0 %v999_v31  ;;  %v1013_v31 = vpack.c.bf16 %v585_v29, %v583_v28  ;;  %v600_v29 = vld [vmem:[#allocation6 + $0x188] sm:$0xff] }
 0x1b4   :  { %1050 = vmatpush1.bf16.msra.mxu1 %v1049_v39  ;;  %v640_v39 = vld [vmem:[#allocation6 + $0x2c8] sm:$0xff] }
 0x1b5   :  { %1052 = vmatprep.subr.bf16.mxu1 %v1051_v44  ;;  %v575_v44 = vld [vmem:[#allocation6 + $0xc0] sm:$0xff]  ;;  %v1067_v47 = vpack.c.bf16 %v642_v40, %v640_v39  ;;  %v654_v39 = vld [vmem:[#allocation6 + $0x338] sm:$0xff] }
 0x1b6   :  { %1002 = vmatpush1.bf16.msra.mxu0 %v1001_v41  ;;  %v1005_v54 = vpack.c.bf16 %v577_v45, %v575_v44  ;;  %v587_v40 = vld [vmem:[#allocation6 + $0x120] sm:$0xff]  ;;  %v589_v41 = vld [vmem:[#allocation6 + $0x130] sm:$0xff] }
 0x1b7   :  { %1004 = vmatprep.subr.bf16.mxu0 %v1003_v43  ;;  %v1017_v43 = vpack.c.bf16 %v589_v41, %v587_v40  ;;  %v651_v44 = vld [vmem:[#allocation6 + $0x320] sm:$0xff]  ;;  %v653_v45 = vld [vmem:[#allocation6 + $0x330] sm:$0xff]  ;;  %v604_v41 = vld [vmem:[#allocation6 + $0x1a8] sm:$0xff] }
 0x1b8   :  { %1054 = vmatpush1.bf16.msra.mxu1 %v1053_v53  ;;  %v646_v53 = vld [vmem:[#allocation6 + $0x2f8] sm:$0xff]  ;;  %v1081_v46 = vpack.c.bf16 %v653_v45, %v651_v44 }
 0x1b9   :  { %1056 = vmatprep.subr.bf16.mxu1 %v1055_v58  ;;  %v581_v58 = vld [vmem:[#allocation6 + $0xf0] sm:$0xff]  ;;  %v1071_v59 = vpack.c.bf16 %v646_v53, %v644_v52  ;;  %v1019_v52 = vpack.c.bf16 %v594_v49, %v592_v48  ;;  %v658_v53 = vld [vmem:[#allocation6 + $0x358] sm:$0xff] }
 0x1ba   :  { %1006 = vmatpush1.bf16.msra.mxu0 %v1005_v54  ;;  %v1009_v62 = vpack.c.bf16 %v581_v58, %v579_v57  ;;  %v591_v54 = vld [vmem:[#allocation6 + $0x140] sm:$0xff]  ;;  %v1083_v57 = vpack.c.bf16 %v658_v53, %v656_v51  ;;  %v670_v45 = vld [vmem:[#allocation6 + $0x3b8] sm:$0xff]  ;;  %v605_v48 = vld [vmem:[#allocation6 + $0x1b0] sm:$0xff] }
 0x1bb   :  { %1008 = vmatprep.subr.bf16.mxu0 %v1007_v56  ;;  %v669_v53 = vld [vmem:[#allocation6 + $0x3b0] sm:$0xff] }
 0x1bc   :  { %1058 = vmatpush1.bf16.msra.mxu1 %v1057_v10 }
 0x1bd   :  { %1060 = vmatprep.subr.bf16.mxu1 %v1059_v23  ;;  %v584_v23 = vld [vmem:[#allocation6 + $0x108] sm:$0xff] }
 0x1be   :  { %1010 = vmatpush1.bf16.msra.mxu0 %v1009_v62  ;;  %v1011_v26 = vpack.c.bf16 %v586_v24, %v584_v23  ;;  %v1370_v62 = vsub.s32 1, %v1342_v50 }
 0x1c0   :  { %1062 = vmatpush1.bf16.msra.mxu1 %v1061_v30  ;;  %v1075_v30 = vpack.c.bf16 %v650_v27, %v648_v25  ;;  %1012 = vmatprep.subr.bf16.mxu0 %v1011_v26  ;;  %v659_v25 = vld [vmem:[#allocation6 + $0x360] sm:$0xff]  ;;  %v661_v26 = vld [vmem:[#allocation6 + $0x370] sm:$0xff] }
 0x1c1   :  { %1064 = vmatprep.subr.bf16.mxu1 %v1063_v35  ;;  %v588_v35 = vld [vmem:[#allocation6 + $0x128] sm:$0xff]  ;;  %v1089_v28 = vpack.c.bf16 %v661_v26, %v659_v25  ;;  %v611_v26 = vld [vmem:[#allocation6 + $0x1e0] sm:$0xff] }
 0x1c2   :  { %1014 = vmatpush1.bf16.msra.mxu0 %v1013_v31  ;;  %v1015_v38 = vpack.c.bf16 %v590_v36, %v588_v35  ;;  %v664_v31 = vld [vmem:[#allocation6 + $0x388] sm:$0xff]  ;;  %v601_v35 = vld [vmem:[#allocation6 + $0x190] sm:$0xff] }
 0x1c3   :  { %v1091_v36 = vpack.c.bf16 %v666_v33, %v664_v31  ;;  %v677_v31 = vld [vmem:[#allocation6 + $0x3f0] sm:$0xff] }
 0x1c4   :  { %1066 = vmatpush1.bf16.msra.mxu1 %v1065_v42  ;;  %v1079_v42 = vpack.c.bf16 %v654_v39, %v652_v37  ;;  %1016 = vmatprep.subr.bf16.mxu0 %v1015_v38  ;;  %v663_v38 = vld [vmem:[#allocation6 + $0x380] sm:$0xff]  ;;  %v665_v39 = vld [vmem:[#allocation6 + $0x390] sm:$0xff] }
 0x1c5   :  { %1068 = vmatprep.subr.bf16.mxu1 %v1067_v47  ;;  %v1366_v47 = vsub.s32 0, %v1342_v50  ;;  %v1093_v40 = vpack.c.bf16 %v665_v39, %v663_v38 }
 0x1c6   :  { %1018 = vmatpush1.bf16.msra.mxu0 %v1017_v43  ;;  %v668_v43 = vld [vmem:[#allocation6 + $0x3a8] sm:$0xff] }
 0x1c7   :  { %1020 = vmatprep.subr.bf16.mxu0 %v1019_v52  ;;  %v1095_v49 = vpack.c.bf16 %v670_v45, %v668_v43  ;;  %v667_v52 = vld [vmem:[#allocation6 + $0x3a0] sm:$0xff] }
 0x1c8   :  { %1070 = vmatpush1.bf16.msra.mxu1 %v1069_v55  ;;  %v593_v55 = vld [vmem:[#allocation6 + $0x150] sm:$0xff] }
 0x1c9   :  { %1072 = vmatprep.subr.bf16.mxu1 %v1071_v59  ;;  %v1021_v58 = vpack.c.bf16 %v593_v55, %v591_v54  ;;  %v655_v59 = vld [vmem:[#allocation6 + $0x340] sm:$0xff]  ;;  %v1097_v54 = vpack.c.bf16 %v669_v53, %v667_v52  ;;  %v608_v55 = vld [vmem:[#allocation6 + $0x1c8] sm:$0xff] }
 0x1cb   :  { %1022 = vmatpush1.bf16.msra.mxu0 %v1021_v58 }
 0x1cc   :  { %1074 = vmatpush1.bf16.msra.mxu1 %v1073_v63  ;;  %v1085_v63 = vpack.c.bf16 %v657_v60, %v655_v59  ;;  %v674_v59 = vld [vmem:[#allocation6 + $0x3d8] sm:$0xff]  ;;  %v607_v60 = vld [vmem:[#allocation6 + $0x1c0] sm:$0xff] }
 0x1cd   :  { %1076 = vmatprep.subr.bf16.mxu1 %v1075_v30  ;;  %v602_v30 = vld [vmem:[#allocation6 + $0x198] sm:$0xff] }
 0x1ce   :  { %v1027_v32 = vpack.c.bf16 %v602_v30, %v600_v29  ;;  %v675_v29 = vld [vmem:[#allocation6 + $0x3e0] sm:$0xff] }
 0x1d0   :  { %1078 = vmatpush1.bf16.msra.mxu1 %v1077_v34  ;;  %v599_v34 = vld [vmem:[#allocation6 + $0x180] sm:$0xff] }
 0x1d1   :  { %1080 = vmatprep.subr.bf16.mxu1 %v1079_v42  ;;  %v1029_v37 = vpack.c.bf16 %v601_v35, %v599_v34  ;;  %v606_v42 = vld [vmem:[#allocation6 + $0x1b8] sm:$0xff] }
 0x1d2   :  { %v1031_v44 = vpack.c.bf16 %v606_v42, %v604_v41 }
 0x1d4   :  { %1082 = vmatpush1.bf16.msra.mxu1 %v1081_v46  ;;  %v603_v46 = vld [vmem:[#allocation6 + $0x1a0] sm:$0xff] }
 0x1d5   :  { %1084 = vmatprep.subr.bf16.mxu1 %v1083_v57  ;;  %v1033_v51 = vpack.c.bf16 %v605_v48, %v603_v46  ;;  %v672_v57 = vld [vmem:[#allocation6 + $0x3c8] sm:$0xff] }
 0x1d8   :  { %1086 = vmatpush1.bf16.msra.mxu1 %v1085_v63  ;;  %v1099_v63 = vpack.c.bf16 %v674_v59, %v672_v57 }
 0x282   :  { %v379_v3 = vpop.f32.mrb[0].mxu1 }
 0x283   :  { %v384_v7 = vrot.slane %v379_v3, 2  ;;  %v972_v10 = vpop.f32.mrb[1].mxu1 }
 0x284   :  { %v660_v10 = vld [vmem:[#allocation6 + $0x368] sm:$0xff] }
 0x285   :  { %v386_v11 = vadd.f32 %v384_v7, %v379_v3  ;;  %v596_v3 = vld [vmem:[#allocation6 + $0x168] sm:$0xff]  ;;  %v598_v7 = vld [vmem:[#allocation6 + $0x178] sm:$0xff] }
 0x287   :  { %v947_v16 = vmul.f32 -1.442695, %v386_v11  ;;  %v1023_v11 = vpack.c.bf16 %v598_v7, %v596_v3  ;;  %v671_v7 = vld [vmem:[#allocation6 + $0x3c0] sm:$0xff] }
 0x289   :  { %1118 = vpow2.f32 %v947_v16  ;;  %v662_v16 = vld [vmem:[#allocation6 + $0x378] sm:$0xff]  ;;  %1024 = vmatprep.subr.bf16.mxu0 %v1023_v11  ;;  %v612_v11 = vld [vmem:[#allocation6 + $0x1e8] sm:$0xff] }
 0x28a   :  { %v1087_v23 = vpack.c.bf16 %v662_v16, %v660_v10  ;;  %v673_v10 = vld [vmem:[#allocation6 + $0x3d0] sm:$0xff] }
 0x28b   :  { %v1101_v16 = vpack.c.bf16 %v673_v10, %v671_v7 }
 0x28c   :  { %1088 = vmatprep.subr.bf16.mxu1 %v1087_v23  ;;  %v678_v23 = vld [vmem:[#allocation6 + $0x3f8] sm:$0xff] }
 0x28d   :  { %1090 = vmatpush1.bf16.msra.mxu1 %v1089_v28  ;;  %v613_v28 = vld [vmem:[#allocation6 + $0x1f0] sm:$0xff] }
 0x28e   :  { %1092 = vmatprep.subr.bf16.mxu1 %v1091_v36  ;;  %v1041_v30 = vpack.c.bf16 %v613_v28, %v611_v26 }
 0x291   :  { %1094 = vmatpush1.bf16.msra.mxu1 %v1093_v40 }
 0x292   :  { %1096 = vmatprep.subr.bf16.mxu1 %v1095_v49 }
 0x293   :  { %v1119_v17 = vpop.eup %1118 }
 0x294   :  { %v390_v22 = vadd.f32 1.0, %v1119_v17  ;;  %v595_v17 = vld [vmem:[#allocation6 + $0x160] sm:$0xff] }
 0x295   :  { %1098 = vmatpush1.bf16.msra.mxu1 %v1097_v54 }
 0x296   :  { %1120 = vrcp.f32 %v390_v22  ;;  %v597_v22 = vld [vmem:[#allocation6 + $0x170] sm:$0xff]  ;;  %1100 = vmatprep.subr.bf16.mxu1 %v1099_v63 }
 0x297   :  { %v1025_v24 = vpack.c.bf16 %v597_v22, %v595_v17  ;;  %v614_v17 = vld [vmem:[#allocation6 + $0x1f8] sm:$0xff]  ;;  %v676_v22 = vld [vmem:[#allocation6 + $0x3e8] sm:$0xff] }
 0x298   :  { %v1103_v25 = vpack.c.bf16 %v678_v23, %v676_v22 }
 0x299   :  { %1026 = vmatpush1.bf16.msra.mxu0 %v1025_v24  ;;  %v1039_v24 = vpack.c.bf16 %v614_v17, %v612_v11  ;;  %1102 = vmatpush1.bf16.msra.mxu1 %v1101_v16 }
 0x29a   :  { %1028 = vmatprep.subr.bf16.mxu0 %v1027_v32  ;;  %v1105_v32 = vpack.c.bf16 %v677_v31, %v675_v29  ;;  %1104 = vmatprep.subr.bf16.mxu1 %v1103_v25 }
 0x29d   :  { %1030 = vmatpush1.bf16.msra.mxu0 %v1029_v37  ;;  %1106 = vmatpush1.bf16.msra.mxu1 %v1105_v32 }
 0x29e   :  { %1032 = vmatprep.subr.bf16.mxu0 %v1031_v44 }
 0x2a0   :  { %v1121_v56 = vpop.eup %1120 }
 0x2a1   :  { %v396_v61 = vrot.slane %v1121_v56, %v1366_v47  ;;  %v1373_v27 = vrot.slane %v1121_v56, %v1370_v62  ;;  %1034 = vmatpush1.bf16.msra.mxu0 %v1033_v51  ;;  %v610_v56 = vld [vmem:[#allocation6 + $0x1d8] sm:$0xff] }
 0x2a2   :  { %v1035_v58 = vpack.c.bf16 %v610_v56, %v608_v55 }
 0x2a3   :  { %402 = vbcast.lane.b32.xlu1 %v396_v61, 264  ;;  %398 = vbcast.lane.b32.xlu0 %v396_v61, 256 }
 0x2a4   :  { %1036 = vmatprep.subr.bf16.mxu0 %v1035_v58 }
 0x2a7   :  { %417 = vbcast.lane.b32.xlu1 %v1373_v27, 256  ;;  %406 = vbcast.lane.b32.xlu0 %v396_v61, 272 }
 0x2ab   :  { %421 = vbcast.lane.b32.xlu1 %v1373_v27, 264  ;;  %410 = vbcast.lane.b32.xlu0 %v396_v61, 280  ;;  %v609_v61 = vld [vmem:[#allocation6 + $0x1d0] sm:$0xff] }
 0x2ac   :  { %v1037_v3 = vpack.c.bf16 %v609_v61, %v607_v60 }
 0x2ae   :  { %1038 = vmatpush1.bf16.msra.mxu0 %v1037_v3 }
 0x2af   :  { %425 = vbcast.lane.b32.xlu1 %v1373_v27, 272  ;;  %1040 = vmatprep.subr.bf16.mxu0 %v1039_v24 }
 0x2b2   :  { %1042 = vmatpush1.bf16.msra.mxu0 %v1041_v30 }
 0x2b3   :  { %429 = vbcast.lane.b32.xlu1 %v1373_v27, 280 }
 0x315   :  { %v403_v33 = vpop.permute.xlu1 %402  ;;  %v399_v34 = vpop.permute.xlu0 %398 }
 0x316   :  { %v1380_v35 = vmul.f32 %v403_v33, %v1282_v8  ;;  %v1383_v36 = vmul.f32 %v403_v33, %v1284_v9  ;;  %v1386_v37 = vmul.f32 %v399_v34, %v1270_v2  ;;  %v1389_v27 = vmul.f32 %v399_v34, %v1274_v4 }
 0x318   :  { %v463_v8 = vadd.f32 %v1380_v35, %v1386_v37  ;;  %v472_v9 = vadd.f32 %v1383_v36, %v1389_v27  ;;  %v499_v2 = vmax.f32 %v1386_v37, %v1380_v35  ;;  %v508_v4 = vmax.f32 %v1389_v27, %v1383_v36 }
 0x319   :  { %v418_v38 = vpop.permute.xlu1 %417  ;;  %v407_v39 = vpop.permute.xlu0 %406 }
 0x31a   :  { %v1392_v40 = vmul.f32 %v407_v39, %v1294_v14  ;;  %v1395_v41 = vmul.f32 %v407_v39, %v1296_v15 }
 0x31c   :  { %v464_v46 = vadd.f32 %v463_v8, %v1392_v40  ;;  %v473_v48 = vadd.f32 %v472_v9, %v1395_v41  ;;  %v500_v49 = vmax.f32 %v499_v2, %v1392_v40  ;;  %v509_v51 = vmax.f32 %v508_v4, %v1395_v41 }
 0x31d   :  { %v422_v42 = vpop.permute.xlu1 %421  ;;  %v411_v43 = vpop.permute.xlu0 %410 }
 0x31e   :  { %v1406_v14 = vmul.f32 %v422_v42, %v1276_v5  ;;  %v1409_v15 = vmul.f32 %v422_v42, %v1278_v6  ;;  %v1412_v44 = vmul.f32 %v411_v43, %v1306_v20  ;;  %v1415_v45 = vmul.f32 %v411_v43, %v1308_v21 }
 0x31f   :  { %v1422_v5 = vmul.f32 %v418_v38, %v1266_v0  ;;  %v1425_v6 = vmul.f32 %v418_v38, %v1268_v1 }
 0x320   :  { %v465_v20 = vadd.f32 %v464_v46, %v1412_v44  ;;  %v474_v52 = vadd.f32 %v473_v48, %v1415_v45  ;;  %v501_v21 = vmax.f32 %v500_v49, %v1412_v44  ;;  %v510_v53 = vmax.f32 %v509_v51, %v1415_v45 }
 0x321   :  { %v426_v54 = vpop.permute.xlu1 %425  ;;  %v481_v55 = vadd.f32 %v1406_v14, %v1422_v5  ;;  %v490_v56 = vadd.f32 %v1409_v15, %v1425_v6  ;;  %v517_v61 = vmax.f32 %v1422_v5, %v1406_v14  ;;  %v526_v63 = vmax.f32 %v1425_v6, %v1409_v15 }
 0x322   :  { %v1436_v0 = vmul.f32 %v426_v54, %v1290_v12  ;;  %v1439_v1 = vmul.f32 %v426_v54, %v1292_v13  ;;  %v466_v57 = vrot.slane %v465_v20, 4  ;;  %v475_v58 = vrot.slane %v474_v52, 4 }
 0x323   :  { %v502_v59 = vrot.slane %v501_v21, 4  ;;  %v511_v60 = vrot.slane %v510_v53, 4 }
 0x324   :  { %v482_v3 = vadd.f32 %v481_v55, %v1436_v0  ;;  %v491_v7 = vadd.f32 %v490_v56, %v1439_v1  ;;  %v467_v10 = vadd.f32 %v466_v57, %v465_v20  ;;  %v476_v12 = vadd.f32 %v475_v58, %v474_v52 }
 0x325   :  { %v503_v11 = vmax.f32 %v501_v21, %v502_v59  ;;  %v512_v16 = vmax.f32 %v510_v53, %v511_v60  ;;  %v430_v13 = vpop.permute.xlu1 %429  ;;  %v518_v17 = vmax.f32 %v517_v61, %v1436_v0  ;;  %v527_v22 = vmax.f32 %v526_v63, %v1439_v1 }
 0x326   :  { %v1450_v23 = vmul.f32 %v430_v13, %v1302_v18  ;;  %v1453_v24 = vmul.f32 %v430_v13, %v1304_v19  ;;  %v468_v25 = vrot.slane %v467_v10, 2  ;;  %v477_v26 = vrot.slane %v476_v12, 2 }
 0x327   :  { %v504_v28 = vrot.slane %v503_v11, 2  ;;  %v513_v29 = vrot.slane %v512_v16, 2 }
 0x328   :  { %v483_v30 = vadd.f32 %v482_v3, %v1450_v23  ;;  %v492_v31 = vadd.f32 %v491_v7, %v1453_v24  ;;  %v519_v32 = vmax.f32 %v518_v17, %v1450_v23  ;;  %v528_v33 = vmax.f32 %v527_v22, %v1453_v24 }
 0x329   :  { %v469_v8 = vadd.f32 %v468_v25, %v467_v10  ;;  %v505_v9 = vmax.f32 %v503_v11, %v504_v28  ;;  %v478_v19 = vadd.f32 %v477_v26, %v476_v12  ;;  %v514_v2 = vmax.f32 %v512_v16, %v513_v29 }
 0x32a   :  { %v484_v34 = vrot.slane %v483_v30, 4  ;;  %v493_v38 = vrot.slane %v492_v31, 4  ;;  %v520_v39 = vrot.slane %v519_v32, 4  ;;  %v529_v18 = vrot.slane %v528_v33, 4 }
 0x32b   :  { %v479_v52 = vrot.slane %v478_v19, 1  ;;  %v515_v21 = vrot.slane %v514_v2, 1  ;;  %v470_v53 = vrot.slane %v469_v8, 1  ;;  %v506_v54 = vrot.slane %v505_v9, 1 }
 0x32c   :  { %v485_v4 = vadd.f32 %v484_v34, %v483_v30  ;;  %v494_v42 = vadd.f32 %v493_v38, %v492_v31  ;;  %v521_v43 = vmax.f32 %v519_v32, %v520_v39  ;;  %v530_v46 = vmax.f32 %v528_v33, %v529_v18 }
 0x32d   :  { %v480_v3 = vadd.f32 %v479_v52, %v478_v19  ;;  %v516_v7 = vmax.f32 %v514_v2, %v515_v21  ;;  %v471_v10 = vadd.f32 %v470_v53, %v469_v8  ;;  %v507_v12 = vmax.f32 %v505_v9, %v506_v54 }
 0x32e   :  { %v486_v48 = vrot.slane %v485_v4, 2  ;;  %v495_v49 = vrot.slane %v494_v42, 2  ;;  %v522_v51 = vrot.slane %v521_v43, 2  ;;  %v531_v20 = vrot.slane %v530_v46, 2 }
 0x32f   :  { %v1209_v2 = vmov 1966171168  }
 0x330   :  { %v487_v55 = vadd.f32 %v486_v48, %v485_v4  ;;  %v523_v56 = vmax.f32 %v521_v43, %v522_v51  ;;  %v496_v57 = vadd.f32 %v495_v49, %v494_v42  ;;  %v532_v58 = vmax.f32 %v530_v46, %v531_v20 }
 0x331   :  { %v853_v4 = vunpack.c.l.s4 %v1209_v2 }
 0x332   :  { %v497_v59 = vrot.slane %v496_v57, 1  ;;  %v533_v60 = vrot.slane %v532_v58, 1  ;;  %v488_v61 = vrot.slane %v487_v55, 1  ;;  %v524_v63 = vrot.slane %v523_v56, 1 }
 0x333   :  { %v854_v42 = vunpack.c.0.s8 %v853_v4 }
 0x334   :  { %v498_v11 = vadd.f32 %v497_v59, %v496_v57  ;;  %v534_v16 = vmax.f32 %v532_v58, %v533_v60  ;;  %v489_v13 = vadd.f32 %v488_v61, %v487_v55  ;;  %v525_v17 = vmax.f32 %v523_v56, %v524_v63 }
 0x335   :  { %v857_v46 = vsub.s32 %v854_v42, %v1342_v50 }
 0x336   :  { %v540_v22 = vsel %vm177_vm4, %v498_v11, %v480_v3  ;;  %v548_v25 = vsel %vm177_vm4, %v534_v16, %v516_v7  ;;  %v539_v26 = vsel %vm177_vm4, %v489_v13, %v471_v10  ;;  %v547_v28 = vsel %vm177_vm4, %v525_v17, %v507_v12 }
 0x337   :  { %743 = vmatprep.mubr.f32.mxu0 %v540_v22  ;;  %814 = vmatprep.mubr.f32.mxu1 %v548_v25 }
 0x338   :  { %744 = vmatmul.mubr.f32.vlgmr.msra.gmra.mrb[2].mxu0 %v539_v26  ;;  %815 = vmatmul.mubr.f32.vlgmr.msra.gmra.mrb[2].mxu1 %v547_v28 }
 0x40b   :  { %v745_v29 = vpop.f32.mrb[2].mxu0  ;;  %v816_v30 = vpop.f32.mrb[2].mxu1 }
 0x40c   :  { %v817_v31 = vadd.f32 %v816_v30, %v745_v29  ;;  %v747_v32 = vpop.f32.mrb[3].mxu0  ;;  %v818_v33 = vpop.f32.mrb[3].mxu1 }
 0x40d   :  { %v819_v34 = vadd.f32 %v818_v33, %v747_v32 }
 0x40e   :  { %v948_v38 = vmul.f32 -1.442695, %v817_v31 }
 0x40f   :  { %v949_v39 = vmul.f32 -1.442695, %v819_v34 }
 0x410   :  { %1122 = vpow2.f32 %v948_v38 }
 0x411   :  { %1124 = vpow2.f32 %v949_v39 }
 0x41a   :  { %v1123_v18 = vpop.eup %1122 }
 0x41b   :  { %v1125_v8 = vpop.eup %1124  ;;  %v827_v9 = vadd.f32 1.0, %v1123_v18 }
 0x41c   :  { %v828_v19 = vadd.f32 1.0, %v1125_v8 }
 0x41d   :  { %1126 = vrcp.f32 %v827_v9 }
 0x41e   :  { %1128 = vrcp.f32 %v828_v19 }
 0x427   :  { %v1127_v43 = vpop.eup %1126 }
 0x428   :  { %v1129_v48 = vpop.eup %1128 }
 0x429   :  { %v851_v49 = vcombine.low %v1127_v43, %v1129_v48 }
 0x42b   :  { %v858_v51 = vrot.slane %v851_v49, %v857_v46 }
 0x42d   :  { %v859_v20 = vcombine.high %v858_v51, %v858_v51  ;;  %v866_v52 = vrot.slane %v858_v51, %v857_v46 }
 0x42f   :  { %v873_v21 = vrot.slane %v859_v20, %v857_v46  ;;  %v877_v53 = vrot.slane %v866_v52, %v1366_v47  ;;  %v881_v54 = vrot.slane %v866_v52, %v1370_v62 }
 0x431   :  { %v885_v55 = vrot.slane %v873_v21, %v1366_v47  ;;  %v889_v56 = vrot.slane %v873_v21, %v1370_v62  ;;  %v894_v57 = vmul.f32 %v877_v53, %v1386_v37  ;;  %v895_v58 = vmul.f32 %v881_v54, %v1389_v27 }
 0x432   :  { %v896_v50 = vmul.f32 %v877_v53, %v1380_v35  ;;  %v897_v59 = vmul.f32 %v881_v54, %v1383_v36  ;;  %v898_v60 = vmul.f32 %v877_v53, %v1392_v40  ;;  %v899_v61 = vmul.f32 %v881_v54, %v1395_v41 }
 0x433   :  { %v900_v63 = vmul.f32 %v877_v53, %v1412_v44  ;;  %v901_v47 = vmul.f32 %v881_v54, %v1415_v45  ;;  %v902_v62 = vmul.f32 %v885_v55, %v1422_v5  ;;  %v903_v37 = vmul.f32 %v889_v56, %v1425_v6  ;;  %910 = vst [vmem:[#allocation8] sm:$0xff] %v894_v57 }
 0x434   :  { %911 = vst [vmem:[#allocation8 + $0x8] sm:$0xff] %v895_v58  ;;  %v904_v35 = vmul.f32 %v885_v55, %v1406_v14  ;;  %v905_v36 = vmul.f32 %v889_v56, %v1409_v15  ;;  %v906_v27 = vmul.f32 %v885_v55, %v1436_v0  ;;  %v907_v40 = vmul.f32 %v889_v56, %v1439_v1 }
 0x435   :  { %912 = vst [vmem:[#allocation8 + $0x10] sm:$0xff] %v896_v50  ;;  %913 = vst [vmem:[#allocation8 + $0x18] sm:$0xff] %v897_v59  ;;  %v908_v41 = vmul.f32 %v885_v55, %v1450_v23  ;;  %v909_v44 = vmul.f32 %v889_v56, %v1453_v24 }
 0x436   :  { %914 = vst [vmem:[#allocation8 + $0x20] sm:$0xff] %v898_v60  ;;  %915 = vst [vmem:[#allocation8 + $0x28] sm:$0xff] %v899_v61 }
 0x437   :  { %916 = vst [vmem:[#allocation8 + $0x30] sm:$0xff] %v900_v63  ;;  %917 = vst [vmem:[#allocation8 + $0x38] sm:$0xff] %v901_v47 }
 0x438   :  { %918 = vst [vmem:[#allocation8 + $0x40] sm:$0xff] %v902_v62  ;;  %919 = vst [vmem:[#allocation8 + $0x48] sm:$0xff] %v903_v37 }
 0x439   :  { %920 = vst [vmem:[#allocation8 + $0x50] sm:$0xff] %v904_v35  ;;  %921 = vst [vmem:[#allocation8 + $0x58] sm:$0xff] %v905_v36 }
 0x43a   :  { %922 = vst [vmem:[#allocation8 + $0x60] sm:$0xff] %v906_v27  ;;  %923 = vst [vmem:[#allocation8 + $0x68] sm:$0xff] %v907_v40 }
 0x43b   :  { %924 = vst [vmem:[#allocation8 + $0x70] sm:$0xff] %v908_v41  ;;  %925 = vst [vmem:[#allocation8 + $0x78] sm:$0xff] %v909_v44 }
 0x43c   :  { %1185 = shalt.err (!%p1182_p6)
}
 0x43d   :  { %s1186_s28 = scalar_lea.hbm %s1503_s4, 2048 }
 0x43e   :  { %p1187_p7 = scmp.ne.s32.totalorder %s1503_s4, %s1186_s28  ;;  %p1190_p8 = scmp.lt.u32.totalorder %s1186_s28, %s1503_s4 }
 0x440   :  { %p1192_p9 = pnand %p1190_p8, %p1187_p7 }
 0x442   :  { %1195 = shalt.err (!%p1192_p9)
}
 0x443   :  { %937 = dma.vmem_to_hbm [thread:$0]  %s932_s22, 2048, %s1503_s4, [#allocation5], %s1203_s25, %s1203_s25, %s1204_s26  }
 0x444   :  { %1200 = dma.done.wait [#allocation5], 2048  }
 0x445   :  { %1201 = vsyncadd [#allocation5], 4294965248 }
 0x446   :  { %941 = vsyncpa [#allocation4], 1 }
 0x447   :  { %942 = vsyncpa [#allocation7], 1 }
 0x448   :  { %943 = vsyncpa [#allocation5], 1 }

</bundles_post_ra>
